<compile_context>
chip_gen: v6e
topology: v6e:2x2x1
jax: 0.10.0
libtpu: 0.0.40
codegen_flags: <defaults>
</compile_context>

<pallas_src>
import functools

import jax
import jax.numpy as jnp
from jax.experimental import pallas as pl
from jax.experimental.pallas import tpu as pltpu

_TARGET_BLOCK_BYTES = 4 * 1024 * 1024       # ~4 MiB/block; 2 bufs x (in+out) = 16 MiB
_VMEM_LIMIT_BYTES = 32 * 1024 * 1024        # explicit: safe on v5e/v6e/v7x scoped VMEM
_MIN_GRID_STEPS = 8                         # pipeline overlap + v7x megacore sharding
_SMALL_FALLBACK_BYTES = 64 * 1024           # below this, fused jnp path is cheaper
_LANE_CANDIDATES = (1024, 512, 256, 128)    # lane-dense slab widths (multiples of 128)
_KERNEL_DTYPES = (jnp.float32, jnp.bfloat16, jnp.float16)


def _quant_math(x, a_bit: int, clamp: bool, out_dtype):
    """Shared forward math (f32 in-register); used by kernel, fallback and reference."""
    xf = x.astype(jnp.float32)
    if a_bit == 1:
        out = jnp.sign(jnp.clip(xf, 0.0, 1.0)) if clamp else jnp.sign(xf)
    else:
        n = float(2 ** a_bit)
        inv_n = 1.0 / n                       # exact power of two -> no divide
        xc = jnp.clip(xf, 0.0, 1.0) if clamp else xf
        out = jnp.floor(xc * n) * inv_n       # already in [0,1] when clamped
    return out.astype(out_dtype)


def _quant_kernel(x_ref, o_ref, *, a_bit: int, clamp: bool):
    # Native dtype in HBM/VMEM, f32 math in-register (VPU has >3x slack here).
    o_ref[...] = _quant_math(x_ref[...], a_bit, clamp, o_ref.dtype)


def activation_quantize(x: jax.Array, a_bit: int, clamp: bool = True,
                        donate: bool = False) -> jax.Array:
    """Elementwise DoReFa-style activation quantization (forward, export=False)."""
    if a_bit == 32:
        return x                              # passthrough: no kernel launch

    orig_shape = x.shape
    dtype = x.dtype
    total = int(x.size)
    itemsize = jnp.dtype(dtype).itemsize
    nbytes = total * itemsize

    # Fallback: tiny inputs, non-divisible counts, or non-native-tile dtypes go
    # through the fused XLA elementwise path (single HBM pass, no extra copies).
    supported = any(dtype == d for d in _KERNEL_DTYPES)
    if (not supported) or nbytes < _SMALL_FALLBACK_BYTES or total % 128 != 0:
        return _quant_math(x, a_bit, clamp, dtype).reshape(orig_shape)

    # Lane-dense 2D slab: widest lane width that divides the element count.
    lanes = next(c for c in _LANE_CANDIDATES if total % c == 0)
    rows = total // lanes
    sublane = 8 * (4 // itemsize)             # 8 for f32, 16 for bf16/f16

    # Block sizing: cap at ~4 MiB, but also guarantee >= ~8 grid steps whenever
    # the slab is larger than 2 sublanes, so DMA in/out overlaps and the
    # "parallel" axis actually shards across both v7x TensorCores.
    blk_cap = max(sublane,
                  (_TARGET_BLOCK_BYTES // (lanes * itemsize)) // sublane * sublane)
    if rows > 2 * sublane:
        per_step = max(sublane, (rows // _MIN_GRID_STEPS) // sublane * sublane)
        block_rows = min(blk_cap, per_step)
    else:
        block_rows = rows                     # full-extent block (no sublane constraint)
    grid = (pl.cdiv(rows, block_rows),)       # ragged last block handled by Pallas

    x2d = x.reshape(rows, lanes)              # metadata-only reshape
    kernel = functools.partial(_quant_kernel, a_bit=a_bit, clamp=clamp)

    extra = {}
    if donate:
        # Only when the caller can donate x: avoids a second full-size HBM buffer.
        extra["input_output_aliases"] = {0: 0}

    out2d = pl.pallas_call(
        kernel,
        out_shape=jax.ShapeDtypeStruct((rows, lanes), dtype),
        grid=grid,
        in_specs=[pl.BlockSpec((block_rows, lanes), lambda i: (i, 0))],
        out_specs=pl.BlockSpec((block_rows, lanes), lambda i: (i, 0)),
        compiler_params=pltpu.CompilerParams(
            dimension_semantics=("parallel",),
            vmem_limit_bytes=_VMEM_LIMIT_BYTES),
        **extra,
    )(x2d)

    return out2d.reshape(orig_shape)


def _reference(x, a_bit, clamp):
    """Pure-JAX reference mirroring the PyTorch forward (f32 math)."""
    if a_bit == 32:
        return x
    xf = x.astype(jnp.float32)
    if clamp:
        xc = jnp.clip(xf, 0.0, 1.0)
        if a_bit == 1:
            out = jnp.sign(xc)
        else:
            n = float(2 ** a_bit)
            out = jnp.clip(jnp.floor(xc * n) / n, 0.0, 1.0)
    else:
        if a_bit == 1:
            out = jnp.sign(xf)
        else:
            n = float(2 ** a_bit)
            out = jnp.floor(xf * n) / n
    return out.astype(x.dtype)


if __name__ == "__main__":
    key = jax.random.PRNGKey(0)
    k1, k2 = jax.random.split(key)

    # Small NCHW activation consistent with the module (takes the fused jnp fallback).
    x_small = jax.random.normal(k1, (2, 4, 16, 16), dtype=jnp.float32) * 1.5
    # Moderately sized activation that exercises the Pallas streaming kernel
    # (multi-step "parallel" grid, lane-dense slab).
    x_big = jax.random.normal(k2, (2, 8, 32, 128), dtype=jnp.float32) * 1.5

    ok = True
    for x in (x_small, x_big):
        for a_bit, clamp in [(4, True), (1, True), (8, False), (1, False), (32, True)]:
            out = jax.block_until_ready(activation_quantize(x, a_bit=a_bit, clamp=clamp))
            ref = _reference(x, a_bit, clamp)
            if out.shape != x.shape or out.dtype != x.dtype:
                ok = False
            if not jnp.allclose(out, ref, atol=1e-6, rtol=1e-6):
                ok = False

    # bf16 path through the Pallas kernel: native-dtype HBM I/O, f32 in-register math.
    xb = x_big.astype(jnp.bfloat16)
    outb = jax.block_until_ready(activation_quantize(xb, a_bit=4, clamp=True))
    refb = _reference(xb, 4, True)
    if outb.shape != xb.shape or outb.dtype != jnp.bfloat16:
        ok = False
    if not jnp.allclose(outb.astype(jnp.float32), refb.astype(jnp.float32),
                        atol=1e-6, rtol=1e-6):
        ok = False

    print("KERNEL_OK" if ok else "KERNEL_MISMATCH")
</pallas_src>

<mosaic_0001>
module attributes {stable_mosaic.version = 11 : i64} {
  func.func @_quant_kernel(%arg0: i32, %arg1: memref<8x1024xf32, #tpu.memory_space<vmem>>, %arg2: memref<8x1024xf32, #tpu.memory_space<vmem>>) attributes {dimension_semantics = [#tpu.dimension_semantics<parallel>], iteration_bounds = array<i64: 8>, scalar_prefetch = 0 : i64, scratch_operands = 0 : i64, tpu.core_type = #tpu.core_type<tc>, window_params = [{transform_indices = @transform_0, window_bounds = array<i64: 8, 1024>}, {transform_indices = @transform_1, window_bounds = array<i64: 8, 1024>}]} {
    %c0 = arith.constant 0 : index
    %c0_0 = arith.constant 0 : index
    %0 = vector.load %arg1[%c0, %c0_0] : memref<8x1024xf32, #tpu.memory_space<vmem>>, vector<8x1024xf32>
    %cst = arith.constant 0.000000e+00 : f32
    %cst_1 = arith.constant 1.000000e+00 : f32
    %1 = vector.broadcast %cst : f32 to vector<8x1024xf32>
    %2 = arith.maximumf %1, %0 : vector<8x1024xf32>
    %3 = vector.broadcast %cst_1 : f32 to vector<8x1024xf32>
    %4 = arith.minimumf %3, %2 : vector<8x1024xf32>
    %cst_2 = arith.constant 1.600000e+01 : f32
    %5 = vector.broadcast %cst_2 : f32 to vector<8x1024xf32>
    %6 = arith.mulf %4, %5 : vector<8x1024xf32>
    %7 = math.floor %6 : vector<8x1024xf32>
    %cst_3 = arith.constant 6.250000e-02 : f32
    %8 = vector.broadcast %cst_3 : f32 to vector<8x1024xf32>
    %9 = arith.mulf %7, %8 : vector<8x1024xf32>
    %c0_4 = arith.constant 0 : index
    %c0_5 = arith.constant 0 : index
    %10 = vector.load %arg2[%c0_4, %c0_5] : memref<8x1024xf32, #tpu.memory_space<vmem>>, vector<8x1024xf32>
    tpu.vector_store %arg2[%c0_4, %c0_5], %9 {strides = array<i32>} : memref<8x1024xf32, #tpu.memory_space<vmem>>, vector<8x1024xf32>,
    return
  }
  func.func @transform_0(%arg0: i32) -> (i32, i32) {
    %c0_i32 = arith.constant 0 : i32
    %c0_i32_0 = arith.constant 0 : i32
    return %arg0, %c0_i32 : i32, i32
  }
  func.func @transform_1(%arg0: i32) -> (i32, i32) {
    %c0_i32 = arith.constant 0 : i32
    %c0_i32_0 = arith.constant 0 : i32
    return %arg0, %c0_i32 : i32, i32
  }
}

</mosaic_0001>

<bundles_post_ra>
// kernel: tpu_custom_call.1
= control target key start
LH: loop header
LB: loop body
LE: loop exit
PB: predicated region body
PF: predicated region fallthrough
CT: control target
= control target key end

     0   :  { %6 = vsyncpa [#allocation3], 0  ;;  %s591_s0 = inlined_call_operand.hbm [shape: f32[64,1024], index: 0, kind: input, shape index: {}]   ;;  %s592_s1 = inlined_call_operand.hbm [shape: f32[64,1024], index: 1, kind: output, shape index: {}]  }
   0x1   :  { %8 = vsyncpa [#allocation3 + $0x1], 0 }
   0x2   :  { %9 = vsyncpa [#allocation4], 0 }
   0x3   :  { %11 = vsyncpa [#allocation4 + $0x1], 0  ;;  %s442_s6 = smov 0   ;;  %s444_s7 = smov 0  }
   0x4   :  { %s446_s8 = smov 0   ;;  %s448_s9 = smov 0  }
   0x5 LB: > { %s463_s10 = sadd.s32 4294967295, %s428_s9   ;;  %s274_s11 = sadd.s32 4294967294, %s428_s9   ;;  %s428_s9 = sphi %s448_s9, %s608_s9   ;;  %s424_s8 = sphi %s446_s8, %s607_s8   ;;  %s420_s7 = sphi %s444_s7, %s606_s7   ;;  %s416_s6 = sphi %s442_s6, %s605_s6  }
   0x6   : > { %s467_s12 = sadd.s32 1, %s428_s9   ;;  %s24_s13 = sadd.s32 1, %s424_s8 }
   0x7   : > { %s21_s14 = ssub.s32 %s428_s9, %s467_s12  ;;  %p31_p0 = scmp.ne.s32.totalorder %s424_s8, %s420_s7 }
   0x8   : > { %p22_p1 = scmp.eq.s32.totalorder %s21_s14, 0  ;;  %p32_p2 = scmp.eq.s32.totalorder %s428_s9, 0 }
   0x9   : > { %p37_p3 = scmp.ne.s32.totalorder %s420_s7, %s416_s6  ;;  %p38_p4 = scmp.eq.s32.totalorder %s463_s10, 0 }
   0xa   : > { %s479_s15 = scalar_select %p22_p1, %s424_s8, %s24_s13  }
   0xb   : > { %p481_p5 = por %p32_p2, %p31_p0  ;;  %p485_p6 = por %p38_p4, %p37_p3 }
   0xc   : > { %p61_p7 = scmp.eq.s32.totalorder %s463_s10, 7  ;;  %p67_p8 = scmp.eq.s32.totalorder %s274_s11, 7 }
   0xd   : > { %s596_s17 = scalar_select %p485_p6, 1, 0 }
   0xe   : > { %p302_p9 = scmp.lt.s32.totalorder %s428_s9, 8  ;;  %p491_p10 = por %p61_p7, %p31_p0 }
   0xf   : > { %p495_p11 = por %p67_p8, %p37_p3  ;;  %s87_s20 = sand.u32 1, %s424_s8  }
  0x10   : > { %s597_s18 = scalar_select %p491_p10, 1, 0 }
  0x11   : > { %s598_s19 = scalar_select %p495_p11, 1, 0 }
  0x12   : > { %s288_s21 = sshll.u32 %s428_s9, 10  ;;  %s277_s22 = sshll.u32 %s87_s20, 6 }
  0x13   : > { %s504_s25 = scalar_lea.hbm %s591_s0, %s288_s21  ;;  %s91_s26 = scalar_lea.vmem [#allocation2], %s277_s22 }
  0x14   : > { %s99_s27 = sshll.u32 %s91_s26, 4  ;;  %p508_p12 = pnand %p302_p9, %p481_p5  ;;  %s512_s27 = int_to_ptr.vmem [resolvable:$true] %s99_s27 }
  0x15   : > { %s88_s29 = scalar_lea.sflag [#allocation3], %s87_s20  ;;  %s336_s30 = scalar_lea.hbm %s504_s25, 1024 }
  0x16   : > { %p337_p1 = scmp.ne.s32.totalorder %s504_s25, %s336_s30  ;;  %p338_p2 = pneg %p508_p12 }
  0x17   : > { %s341_s4 = scalar_lea.hbm %s591_s0, 8192  ;;  %p342_p5 = scmp.lt.s32.totalorder %s504_s25, %s591_s0 }
  0x18   : > { %p339_p3 = pnand %p338_p2, %p337_p1  ;;  %p343_p7 = scmp.lt.s32.totalorder %s341_s4, %s336_s30 }
  0x1a   : > { %p340_p4 = pneg %p339_p3  ;;  %p344_p8 = por %p343_p7, %p342_p5 }
  0x1c   : > { %p345_p9 = pnand %p344_p8, %p340_p4 }
  0x1e   : > { %348 = shalt.err (!%p345_p9)
}
  0x1f   : > { %s349_s13 = scalar_lea.vmem %s512_s27, 1024  ;;  %s430_s14 = smov [#allocation2]  }
  0x20   : > { %p350_p13 = scmp.ne.s32.totalorder %s512_s27, %s349_s13  ;;  %s354_s16 = sshll.u32 %s430_s14, 4  ;;  %s355_s16 = int_to_ptr.vmem [resolvable:$false] %s354_s16 }
  0x21   : > { %s356_s20 = scalar_lea.vmem %s355_s16, 2048  ;;  %p357_p3 = scmp.lt.s32.totalorder %s512_s27, %s355_s16 }
  0x22   : > { %p352_p0 = pnand %p350_p13, %p338_p2  ;;  %p358_p11 = scmp.lt.s32.totalorder %s356_s20, %s349_s13 }
  0x24   : > { %p353_p1 = pneg %p352_p0  ;;  %p359_p10 = por %p358_p11, %p357_p3 }
  0x26   : > { %p360_p6 = pnand %p359_p10, %p353_p1 }
  0x28   : > { %363 = shalt.err (!%p360_p6)
}
  0x29   : > { %297 = dma.hbm_to_vmem [thread:$0]  (!%p508_p12), %s504_s25, 1024, %s512_s27, %s88_s29  }
  0x2a   : > { %p600_p4 = scmp.lt.s32.totalorder %s428_s9, 9  ;;  %p601_p5 = scmp.ge.s32.totalorder %s428_s9, 1 }
  0x2c   : > { %p105_p13 = pnand %p601_p5, %p600_p4 }
  0x2d   : > { %s539_s21 = sand.u32 (!%p105_p13), 1, %s420_s7   ;;  %p602_p6 = scmp.ne.s32.totalorder (!%p105_p13), %s596_s17, 0 }
  0x2e   : > { %108 = sbr.rel (%p105_p13) target bundleno = 79 (0x4f), region = 24  ;;  %s281_s22 = sshll.u32 (!%p105_p13), %s539_s21, 6 }
  0x2f   : > { %s111_s23 = scalar_lea.sflag (!%p105_p13), [#allocation3], %s539_s21  ;;  %s114_s24 = scalar_lea.vmem (!%p105_p13), [#allocation2], %s281_s22 }
  0x33   : > { %407 = dma.done.wait (%p602_p6), %s111_s23, 1024  }
  0x34   : > { %409 = vsyncadd (%p602_p6), %s111_s23, 4294966272  ;;  %v133_v0 = vld [vmem:[%s114_s24] sm:$0xff]  ;;  %v134_v1 = vld [vmem:[%s114_s24 + $0x8] sm:$0xff]  ;;  %s289_s17 = sshll.u32 %s463_s10, 10  ;;  %s132_s25 = scalar_lea.vmem [#allocation5], %s281_s22 }
  0x35   : > { %v135_v2 = vld [vmem:[%s114_s24 + $0x10] sm:$0xff]  ;;  %v141_v3 = vmax.f32 %v133_v0, 0.0  ;;  %v142_v4 = vmax.f32 %v134_v1, 0.0  ;;  %v136_v6 = vld [vmem:[%s114_s24 + $0x18] sm:$0xff]  ;;  %v137_v7 = vld [vmem:[%s114_s24 + $0x20] sm:$0xff]  ;;  %s204_s26 = sshll.u32 %s132_s25, 4  ;;  %s555_s10 = scalar_lea.hbm %s592_s1, %s289_s17  ;;  %s205_s26 = int_to_ptr.vmem [resolvable:$true] %s204_s26 }
  0x36   : > { %v143_v5 = vmax.f32 %v135_v2, 0.0  ;;  %v138_v8 = vld [vmem:[%s114_s24 + $0x28] sm:$0xff]  ;;  %v144_v9 = vmax.f32 %v136_v6, 0.0  ;;  %v145_v10 = vmax.f32 %v137_v7, 0.0  ;;  %v139_v12 = vld [vmem:[%s114_s24 + $0x30] sm:$0xff]  ;;  %v140_v13 = vld [vmem:[%s114_s24 + $0x38] sm:$0xff] }
  0x37   : > { %v146_v11 = vmax.f32 %v138_v8, 0.0  ;;  %v149_v14 = vmin.f32 %v141_v3, 1.0  ;;  %v150_v15 = vmin.f32 %v142_v4, 1.0  ;;  %v147_v17 = vmax.f32 %v139_v12, 0.0  ;;  %s190_s29 = scalar_lea.sflag [#allocation4], %s539_s21  ;;  %s364_s30 = scalar_lea.vmem %s205_s26, 1024 }
  0x38   : > { %v151_v16 = vmin.f32 %v143_v5, 1.0  ;;  %v152_v18 = vmin.f32 %v144_v9, 1.0  ;;  %v153_v19 = vmin.f32 %v145_v10, 1.0  ;;  %v148_v21 = vmax.f32 %v140_v13, 0.0  ;;  %p365_p10 = scmp.ne.s32.totalorder %s205_s26, %s364_s30  ;;  %p603_p11 = scmp.ne.s32.totalorder %s597_s18, 0 }
  0x39   : > { %v154_v20 = vmin.f32 %v146_v11, 1.0  ;;  %v157_v22 = vmul.f32 16.0, %v149_v14  ;;  %v158_v23 = vmul.f32 16.0, %v150_v15  ;;  %v155_v25 = vmin.f32 %v147_v17, 1.0  ;;  %s431_s2 = smov [#allocation5]  }
  0x3a   : > { %v159_v24 = vmul.f32 16.0, %v151_v16  ;;  %v160_v26 = vmul.f32 16.0, %v152_v18  ;;  %v161_v27 = vmul.f32 16.0, %v153_v19  ;;  %v156_v29 = vmin.f32 %v148_v21, 1.0  ;;  %p366_p12 = pnand %p365_p10, %p603_p11  ;;  %s368_s3 = sshll.u32 %s431_s2, 4  ;;  %s369_s3 = int_to_ptr.vmem [resolvable:$false] %s368_s3 }
  0x3b   : > { %v162_v28 = vmul.f32 16.0, %v154_v20  ;;  %v165_v30 = vfloor.f32 %v157_v22  ;;  %v166_v31 = vfloor.f32 %v158_v23  ;;  %v163_v33 = vmul.f32 16.0, %v155_v25  ;;  %s370_s4 = scalar_lea.vmem %s369_s3, 2048  ;;  %p371_p2 = scmp.lt.s32.totalorder %s205_s26, %s369_s3 }
  0x3c   : > { %v167_v32 = vfloor.f32 %v159_v24  ;;  %v168_v34 = vfloor.f32 %v160_v26  ;;  %v169_v35 = vfloor.f32 %v161_v27  ;;  %v164_v37 = vmul.f32 16.0, %v156_v29  ;;  %p367_p0 = pneg %p366_p12  ;;  %p372_p7 = scmp.lt.s32.totalorder %s370_s4, %s364_s30 }
  0x3d   : > { %v170_v36 = vfloor.f32 %v162_v28  ;;  %v173_v38 = vmul.f32 0.0625, %v165_v30  ;;  %v174_v39 = vmul.f32 0.0625, %v166_v31  ;;  %v171_v41 = vfloor.f32 %v163_v33 }
  0x3e   : > { %v175_v40 = vmul.f32 0.0625, %v167_v32  ;;  %v176_v42 = vmul.f32 0.0625, %v168_v34  ;;  %v177_v43 = vmul.f32 0.0625, %v169_v35  ;;  %v172_v45 = vfloor.f32 %v164_v37  ;;  %p373_p8 = por %p372_p7, %p371_p2 }
  0x3f   : > { %v178_v44 = vmul.f32 0.0625, %v170_v36  ;;  %181 = vst [vmem:[%s132_s25] sm:$0xff] %v173_v38  ;;  %182 = vst [vmem:[%s132_s25 + $0x8] sm:$0xff] %v174_v39  ;;  %v179_v46 = vmul.f32 0.0625, %v171_v41 }
  0x40   : > { %183 = vst [vmem:[%s132_s25 + $0x10] sm:$0xff] %v175_v40  ;;  %184 = vst [vmem:[%s132_s25 + $0x18] sm:$0xff] %v176_v42  ;;  %v180_v47 = vmul.f32 0.0625, %v172_v45  ;;  %p374_p9 = pnand %p373_p8, %p367_p0 }
  0x41   : > { %185 = vst [vmem:[%s132_s25 + $0x20] sm:$0xff] %v177_v43  ;;  %186 = vst [vmem:[%s132_s25 + $0x28] sm:$0xff] %v178_v44 }
  0x42   : > { %187 = vst [vmem:[%s132_s25 + $0x30] sm:$0xff] %v179_v46  ;;  %188 = vst [vmem:[%s132_s25 + $0x38] sm:$0xff] %v180_v47 }
  0x43   : > { %377 = shalt.err (!%p374_p9)
}
  0x44   : > { %s378_s5 = scalar_lea.hbm %s555_s10, 1024  ;;  %s382_s14 = scalar_lea.hbm %s592_s1, 8192 }
  0x45   : > { %p379_p1 = scmp.ne.s32.totalorder %s555_s10, %s378_s5  ;;  %p383_p5 = scmp.lt.s32.totalorder %s555_s10, %s592_s1 }
  0x46   : > { %p384_p13 = scmp.lt.s32.totalorder %s382_s14, %s378_s5 }
  0x47   : > { %p380_p3 = pnand %p379_p1, %p603_p11 }
  0x48   : > { %p385_p6 = por %p384_p13, %p383_p5 }
  0x49   : > { %p381_p4 = pneg %p380_p3 }
  0x4b   : > { %p386_p10 = pnand %p385_p6, %p381_p4 }
  0x4d   : > { %389 = shalt.err (!%p386_p10)
}
  0x4e   : > { %292 = dma.vmem_to_hbm [thread:$0]  (%p603_p11), %s205_s26, 1024, %s555_s10, %s190_s29  }
  0x4f PF: > { %p303_p12 = scmp.ge.s32.totalorder %s428_s9, 2  ;;  %s216_s21 = sand.u32 1, %s416_s6  }
  0x50   : > { %p604_p0 = scmp.ne.s32.totalorder %s598_s19, 0  ;;  %s217_s22 = scalar_lea.sflag [#allocation4], %s216_s21 }
  0x52   : > { %p299_p2 = pnand %p303_p12, %p604_p0 }
  0x54   : > { %p300_p7 = pneg %p299_p2 }
  0x56   : > { %411 = dma.done.wait (%p300_p7), %s217_s22, 1024  }
  0x57   : > { %413 = vsyncadd (%p300_p7), %s217_s22, 4294966272  ;;  %p14_p8 = scmp.ge.s32.totalorder %s467_s12, 10   ;;  %s605_s6 = smov %s420_s7 }
  0x58   : > { %s606_s7 = smov %s424_s8  ;;  %s607_s8 = smov %s479_s15 }
  0x59   : > { %s608_s9 = smov %s467_s12  ;;  %16 = sbr.rel (!%p14_p8) target bundleno = 5 (0x5), region = 69 }
  0x5e   :  { %222 = vsyncpa [#allocation3], 1 }
  0x5f   :  { %224 = vsyncpa [#allocation3 + $0x1], 1 }
  0x60   :  { %225 = vsyncpa [#allocation4], 1 }
  0x61   :  { %227 = vsyncpa [#allocation4 + $0x1], 1 }

</bundles_post_ra>
